<compile_context>
chip_gen: v7x
topology: tpu7x:2x2x1
jax: 0.10.0
libtpu: 0.0.40
codegen_flags: <defaults>
</compile_context>

<pallas_src>
import functools

import jax
import jax.numpy as jnp
from jax import lax
from jax.experimental import pallas as pl
from jax.experimental.pallas import tpu as pltpu


# ----------------------------------------------------------------------------
# Tile-size helper
# ----------------------------------------------------------------------------
def _fit_tile(dim, target, multiple):
    """Largest multiple of `multiple` that divides `dim` and is <= `target`.

    Falls back to the full `dim` (always a legal block: equal to the array
    dim) only when no such divisor exists (e.g. dim = 197).
    """
    best = None
    t = multiple
    top = min(target, dim)
    while t <= top:
        if dim % t == 0:
            best = t
        t += multiple
    return best if best is not None else dim


# ----------------------------------------------------------------------------
# Tiled linear:  out = x @ W (+ b)
# ----------------------------------------------------------------------------
def _linear_kernel(x_ref, w_ref, o_ref, acc_ref):
    @pl.when(pl.program_id(2) == 0)
    def _():
        acc_ref[...] = jnp.zeros_like(acc_ref)

    a = x_ref[...].astype(w_ref.dtype)       # single cast at load (no-op if bf16 in)
    acc_ref[...] += jnp.dot(a, w_ref[...], preferred_element_type=jnp.float32)

    @pl.when(pl.program_id(2) == pl.num_programs(2) - 1)
    def _():
        o_ref[...] = acc_ref[...].astype(o_ref.dtype)


def _linear_bias_kernel(x_ref, w_ref, b_ref, o_ref, acc_ref):
    @pl.when(pl.program_id(2) == 0)
    def _():
        acc_ref[...] = jnp.zeros_like(acc_ref)

    a = x_ref[...].astype(w_ref.dtype)
    acc_ref[...] += jnp.dot(a, w_ref[...], preferred_element_type=jnp.float32)

    @pl.when(pl.program_id(2) == pl.num_programs(2) - 1)
    def _():
        o_ref[...] = (acc_ref[...] + b_ref[...].astype(jnp.float32)).astype(o_ref.dtype)


def linear_pallas(x2d, w, b=None, *, out_dtype=None, tm=256, tn=256, tk=512):
    """x2d: (M, Cin), w: (Cin, Cout) [bf16 ok], b: (Cout,) or None -> (M, Cout).

    out_dtype lets callers keep big intermediates in bf16 (qkv / heads) while
    the accumulation is always f32 in VMEM.
    TODO(synk): on v7x a larger tk (e.g. 1024) may help via MRB accumulation;
    left at 512 pending measurement.
    """
    M, Cin = x2d.shape
    Cout = w.shape[1]
    out_dtype = x2d.dtype if out_dtype is None else out_dtype

    tm = _fit_tile(M, tm, 8)        # sublane axis: multiples of 8
    tn = _fit_tile(Cout, tn, 128)   # lane axes: multiples of 128
    tk = _fit_tile(Cin, tk, 128)
    grid = (M // tm, Cout // tn, Cin // tk)

    x_spec = pl.BlockSpec((tm, tk), lambda i, j, k: (i, k))
    w_spec = pl.BlockSpec((tk, tn), lambda i, j, k: (k, j))
    o_spec = pl.BlockSpec((tm, tn), lambda i, j, k: (i, j))

    cost = pl.CostEstimate(
        flops=2 * M * Cout * Cin,
        transcendentals=0,
        bytes_accessed=(x2d.size * x2d.dtype.itemsize
                        + w.size * w.dtype.itemsize
                        + M * Cout * jnp.dtype(out_dtype).itemsize),
    )

    if b is None:
        kernel, in_specs, args = _linear_kernel, [x_spec, w_spec], (x2d, w)
    else:
        b_spec = pl.BlockSpec((1, tn), lambda i, j, k: (0, j))
        kernel = _linear_bias_kernel
        in_specs = [x_spec, w_spec, b_spec]
        args = (x2d, w, b.reshape(1, Cout))

    return pl.pallas_call(
        kernel,
        out_shape=jax.ShapeDtypeStruct((M, Cout), out_dtype),
        grid=grid,
        in_specs=in_specs,
        out_specs=o_spec,
        scratch_shapes=[pltpu.VMEM((tm, tn), jnp.float32)],
        compiler_params=pltpu.CompilerParams(
            dimension_semantics=("parallel", "parallel", "arbitrary")),
        cost_estimate=cost,
    )(*args)


# ----------------------------------------------------------------------------
# Flash-tiled multi-head attention on a lane-dense (B, T, 3C) qkv tensor
# ----------------------------------------------------------------------------
def _flash_attn_kernel(*refs, num_heads, head_dim, scale, n_x, split_qkv,
                       mxu_dtype):
    """One (b, q-tile, kv-tile) grid step of online-softmax attention.

    qkv channel layout is [q | k | v] with heads contiguous (Dh each) inside
    every C-wide section. Per-head running state lives in VMEM scratch:
      m_sc, l_sc : (H, tq, 1)  running max / denom
      acc_sc     : (H, tq, Dh) running (unnormalized) PV accumulator
    Normalization is deferred to the last kv step (pl.reciprocal, EUP slot),
    and each head stores straight into its lane slice of o_ref (no concat).
    """
    if split_qkv:  # C % 128 == 0: q/k/v arrive as separate C-wide column blocks
        q_ref, k_ref, v_ref, o_ref, m_sc, l_sc, acc_sc = refs
        k_col0, v_col0 = 0, 0
    else:          # fallback: full [q|k|v] row blocks, k/v share one stream
        q_ref, kv_ref, o_ref, m_sc, l_sc, acc_sc = refs
        k_ref = v_ref = kv_ref
        C_full = num_heads * head_dim
        k_col0, v_col0 = C_full, 2 * C_full

    H, Dh = num_heads, head_dim
    tq = o_ref.shape[1]
    tkv = k_ref.shape[1]
    qi = pl.program_id(1)
    ki = pl.program_id(2)
    nk = pl.num_programs(2)

    @pl.when(ki == 0)
    def _():
        m_sc[...] = jnp.full_like(m_sc, -1e30)
        l_sc[...] = jnp.zeros_like(l_sc)
        acc_sc[...] = jnp.zeros_like(acc_sc)

    if n_x is not None:
        # PCP-MAE cross path: query rows < n_x (x branch) attend only to keys
        # < n_x; query rows >= n_x (y branch) attend to all keys.
        q_idx = qi * tq + lax.broadcasted_iota(jnp.int32, (tq, tkv), 0)
        k_idx = ki * tkv + lax.broadcasted_iota(jnp.int32, (tq, tkv), 1)
        allowed = jnp.logical_or(q_idx >= n_x, k_idx < n_x)

    def compute():
        for h in range(H):
            lo = h * Dh
            # Fold scale into q: tq*Dh work instead of tq*tkv on the scores.
            q = (q_ref[0, :, lo:lo + Dh] * scale).astype(mxu_dtype)
            k = k_ref[0, :, k_col0 + lo:k_col0 + lo + Dh].astype(mxu_dtype)
            v = v_ref[0, :, v_col0 + lo:v_col0 + lo + Dh].astype(mxu_dtype)

            # Contract last dims directly — no materialized k.T (MXU-native).
            s = lax.dot_general(q, k, (((1,), (1,)), ((), ())),
                                preferred_element_type=jnp.float32)   # (tq, tkv)
            if n_x is not None:
                s = jnp.where(allowed, s, jnp.float32(-1e30))

            m_prev = m_sc[h]                                           # (tq, 1)
            m_new = jnp.maximum(m_prev, jnp.max(s, axis=-1, keepdims=True))
            alpha = jnp.exp(m_prev - m_new)
            # TODO(synk): on v6e/v7x the exp could run in bf16 (2x EUP rate).
            p = jnp.exp(s - m_new)                       # unnormalized probs
            l_sc[h] = alpha * l_sc[h] + jnp.sum(p, axis=-1, keepdims=True)
            acc_sc[h] = alpha * acc_sc[h] + jnp.dot(
                p.astype(mxu_dtype), v, preferred_element_type=jnp.float32)
            m_sc[h] = m_new

    if n_x is None:
        compute()
    else:
        # Skip (q-tile, kv-tile) pairs that are fully masked (x-branch queries
        # vs. keys entirely past the branch boundary).
        needed = jnp.logical_or((qi + 1) * tq > n_x, ki * tkv < n_x)
        pl.when(needed)(compute)

    @pl.when(ki == nk - 1)
    def _():
        # Deferred softmax normalization: one (tq, Dh) multiply per head, then
        # a direct lane-slice store (no head concat).
        for h in range(H):
            inv = pl.reciprocal(l_sc[h], approx=True)                  # (tq, 1)
            o_ref[0, :, h * Dh:(h + 1) * Dh] = (acc_sc[h] * inv).astype(o_ref.dtype)


def attention_pallas(qkv, dim, num_heads, scale, *, n_x=None, out_dtype=None,
                     tq=256, tkv=512, mxu_dtype=jnp.bfloat16,
                     vmem_limit_bytes=48 * 1024 * 1024):
    """qkv: (B, T, 3*dim), lane-dense. Returns head-merged (B, T, dim).

    n_x=None -> plain self-attention over all T tokens.
    n_x=N    -> PCP-MAE cross path: rows [:N] are the x branch (q/k/v on the
                first N tokens), rows [N:] are the y branch (q on the trailing
                tokens, k/v over the full sequence).

    Flash-style tiling: grid (B, T/tq, T/tkv) with online softmax. Default
    tiles (256, 512) are sized for v7x's 64 MiB VMEM; v5e/v6e can pass up to
    1024. bf16 MXU operands on every generation, f32 accumulation.
    """
    B, T, threeC = qkv.shape
    C = dim
    assert threeC == 3 * C and C % num_heads == 0
    Dh = C // num_heads
    out_dtype = qkv.dtype if out_dtype is None else out_dtype
    if n_x is not None:
        assert 0 < n_x < T

    tq = _fit_tile(T, tq, 8)
    tkv = _fit_tile(T, tkv, 8)
    nq, nkv = T // tq, T // tkv

    split_qkv = (C % 128 == 0)   # per-section column blocks need lane-aligned C
    if split_qkv:
        in_specs = [
            pl.BlockSpec((1, tq, C), lambda b, i, j: (b, i, 0)),    # q columns
            pl.BlockSpec((1, tkv, C), lambda b, i, j: (b, j, 1)),   # k columns
            pl.BlockSpec((1, tkv, C), lambda b, i, j: (b, j, 2)),   # v columns
        ]
        args = (qkv, qkv, qkv)
    else:
        # Lane width not 128-aligned (small/demo dims): fetch full [q|k|v] row
        # blocks; k and v share one stream, q is fetched once per q-tile.
        in_specs = [
            pl.BlockSpec((1, tq, threeC), lambda b, i, j: (b, i, 0)),
            pl.BlockSpec((1, tkv, threeC), lambda b, i, j: (b, j, 0)),
        ]
        args = (qkv, qkv)

    kernel = functools.partial(
        _flash_attn_kernel, num_heads=num_heads, head_dim=Dh, scale=scale,
        n_x=n_x, split_qkv=split_qkv, mxu_dtype=mxu_dtype)

    if n_x is None:
        flops = 4 * B * num_heads * T * T * Dh
        trans = B * num_heads * T * T
    else:
        ly = T - n_x
        flops = 4 * B * num_heads * Dh * (n_x * n_x + ly * T)
        trans = B * num_heads * (n_x * n_x + ly * T)

    return pl.pallas_call(
        kernel,
        out_shape=jax.ShapeDtypeStruct((B, T, C), out_dtype),
        grid=(B, nq, nkv),
        in_specs=in_specs,
        out_specs=pl.BlockSpec((1, tq, C), lambda b, i, j: (b, i, 0)),
        scratch_shapes=[
            pltpu.VMEM((num_heads, tq, 1), jnp.float32),    # running max m
            pltpu.VMEM((num_heads, tq, 1), jnp.float32),    # running denom l
            pltpu.VMEM((num_heads, tq, Dh), jnp.float32),   # running PV acc
        ],
        compiler_params=pltpu.CompilerParams(
            # B and the q-tile axis are parallel -> both v7x TensorCores get
            # work even at B == 1; the kv axis carries the online-softmax state.
            dimension_semantics=("parallel", "parallel", "arbitrary"),
            vmem_limit_bytes=vmem_limit_bytes),
        cost_estimate=pl.CostEstimate(
            flops=flops, transcendentals=trans,
            bytes_accessed=(qkv.size * qkv.dtype.itemsize
                            + B * T * C * jnp.dtype(out_dtype).itemsize)),
    )(*args)


# ----------------------------------------------------------------------------
# Attention module (parameters + forward glue)
# ----------------------------------------------------------------------------
class AttentionPallas:
    def __init__(self, dim, num_heads=8, qkv_bias=False, qk_scale=None,
                 attn_drop=0.0, proj_drop=0.0, *, key,
                 mxu_dtype=jnp.bfloat16):
        assert dim % num_heads == 0
        # TODO(synk): dropout with p > 0 is not implemented (inference path).
        assert attn_drop == 0.0 and proj_drop == 0.0, "dropout not supported"
        self.dim = dim
        self.num_heads = num_heads
        head_dim = dim // num_heads
        # `is not None` (not `or`) so an explicit qk_scale=0.0 is honored.
        self.scale = qk_scale if qk_scale is not None else head_dim ** (-0.5)
        # bf16 is the fast MXU operand type on ALL generations (incl. v5e);
        # accumulation stays f32 in the kernels.
        self.mxu_dtype = mxu_dtype

        k1, k2, k3, k4 = jax.random.split(key, 4)
        # Deterministic synthetic parameters (not a checkpoint load), stored
        # pre-transposed as (Cin, Cout) and kept in bf16 to halve HBM/VMEM
        # traffic; biases stay f32 (added to the f32 accumulator).
        self.w_qkv = (jax.random.normal(k1, (dim, 3 * dim), jnp.float32) * 0.02
                      ).astype(mxu_dtype)
        self.b_qkv = ((jax.random.normal(k4, (3 * dim,), jnp.float32) * 0.02)
                      if qkv_bias else None)   # qkv_bias=False -> bias-free kernel
        self.w_proj = (jax.random.normal(k2, (dim, dim), jnp.float32) * 0.02
                       ).astype(mxu_dtype)
        self.b_proj = jax.random.normal(k3, (dim,), jnp.float32) * 0.02

    def __call__(self, x, y=None):
        B, N, C = x.shape
        H = self.num_heads
        interm = self.mxu_dtype   # bf16 intermediates between the pallas calls

        if y is None:
            qkv = linear_pallas(x.reshape(B * N, C), self.w_qkv, self.b_qkv,
                                out_dtype=interm)
            qkv = qkv.reshape(B, N, 3 * C)                      # free (contiguous)
            heads = attention_pallas(qkv, C, H, self.scale,
                                     out_dtype=interm,
                                     mxu_dtype=self.mxu_dtype)  # (B, N, C) bf16
            out = linear_pallas(heads.reshape(B * N, C), self.w_proj,
                                self.b_proj, out_dtype=x.dtype)
            return out.reshape(B, N, C)

        L = y.shape[1]
        T = N + L
        xy = jnp.concatenate([x, y], axis=1)                    # (B, T, C)
        qkv = linear_pallas(xy.reshape(B * T, C), self.w_qkv, self.b_qkv,
                            out_dtype=interm)
        qkv = qkv.reshape(B, T, 3 * C)
        # One flash-attention launch computes both branches via the n_x mask.
        heads = attention_pallas(qkv, C, H, self.scale, n_x=N,
                                 out_dtype=interm,
                                 mxu_dtype=self.mxu_dtype)      # (B, T, C) bf16
        # One projection over both branch outputs, then split into (x_out, y_out).
        out = linear_pallas(heads.reshape(B * T, C), self.w_proj, self.b_proj,
                            out_dtype=x.dtype)
        out = out.reshape(B, T, C)
        return out[:, :N], out[:, N:]


# ----------------------------------------------------------------------------
# Pure-JAX reference (mirrors the PyTorch forward) for a sanity check
# ----------------------------------------------------------------------------
def _ref_attn(q, k, v, scale):
    s = jnp.einsum('bhqd,bhkd->bhqk', q, k) * scale
    p = jax.nn.softmax(s, axis=-1)
    return jnp.einsum('bhqk,bhkd->bhqd', p, v)


def _reference_forward(attn, x, y=None):
    B, N, C = x.shape
    H = attn.num_heads
    Dh = C // H
    xy = x if y is None else jnp.concatenate([x, y], axis=1)
    T = xy.shape[1]
    qkv = xy.reshape(B * T, C) @ attn.w_qkv.astype(jnp.float32)
    if attn.b_qkv is not None:
        qkv = qkv + attn.b_qkv
    qkv = qkv.reshape(B, T, 3, H, Dh).transpose(2, 0, 3, 1, 4)   # (3,B,H,T,Dh)
    q, k, v = qkv[0], qkv[1], qkv[2]

    def proj(o):                                                 # o: (B,H,L,Dh)
        Lq = o.shape[2]
        om = o.transpose(0, 2, 1, 3).reshape(B * Lq, C)
        return (om @ attn.w_proj.astype(jnp.float32) + attn.b_proj
                ).reshape(B, Lq, C)

    if y is None:
        return proj(_ref_attn(q, k, v, attn.scale))
    ox = _ref_attn(q[:, :, :N], k[:, :, :N], v[:, :, :N], attn.scale)
    oy = _ref_attn(q[:, :, N:], k, v, attn.scale)
    return proj(ox), proj(oy)


# ----------------------------------------------------------------------------
# Demo
# ----------------------------------------------------------------------------
if __name__ == "__main__":
    key = jax.random.PRNGKey(0)
    k_param, k_x, k_y = jax.random.split(key, 3)

    B, N, L, C, H = 2, 8, 4, 32, 4   # head_dim = 8

    attn = AttentionPallas(dim=C, num_heads=H, qkv_bias=False, key=k_param)

    x = jax.random.normal(k_x, (B, N, C), jnp.float32)
    y = jax.random.normal(k_y, (B, L, C), jnp.float32)

    # Self-attention path (y is None)
    out_self = attn(x)
    jax.block_until_ready(out_self)
    assert out_self.shape == (B, N, C)
    ref_self = _reference_forward(attn, x)
    assert float(jnp.max(jnp.abs(out_self - ref_self))) < 1e-2

    # Cross path (x, y) -> (x_out, y_out)
    x_out, y_out = attn(x, y)
    jax.block_until_ready((x_out, y_out))
    assert x_out.shape == (B, N, C) and y_out.shape == (B, L, C)
    ref_x, ref_y = _reference_forward(attn, x, y)
    assert float(jnp.max(jnp.abs(x_out - ref_x))) < 1e-2
    assert float(jnp.max(jnp.abs(y_out - ref_y))) < 1e-2

    print("KERNEL_OK")
</pallas_src>

<mosaic_0001>
module attributes {stable_mosaic.version = 11 : i64} {
  func.func @_linear_kernel(%arg0: i32, %arg1: i32, %arg2: i32, %arg3: memref<16x32xf32, #tpu.memory_space<vmem>>, %arg4: memref<32x96xbf16, #tpu.memory_space<vmem>>, %arg5: memref<16x96xbf16, #tpu.memory_space<vmem>>, %arg6: memref<16x96xf32, #tpu.memory_space<vmem>>) attributes {dimension_semantics = [#tpu.dimension_semantics<parallel>, #tpu.dimension_semantics<parallel>, #tpu.dimension_semantics<arbitrary>], iteration_bounds = array<i64: 1, 1, 1>, scalar_prefetch = 0 : i64, scratch_operands = 1 : i64, tpu.core_type = #tpu.core_type<tc>, window_params = [{transform_indices = @transform_0, window_bounds = array<i64: 16, 32>}, {transform_indices = @transform_1, window_bounds = array<i64: 32, 96>}, {transform_indices = @transform_2, window_bounds = array<i64: 16, 96>}]} {
    %c0_i32 = arith.constant 0 : i32
    %0 = arith.cmpi eq, %arg2, %c0_i32 : i32
    %1 = arith.extui %0 : i1 to i32
    %c0_i32_0 = arith.constant 0 : i32
    %2 = arith.cmpi ne, %1, %c0_i32_0 : i32
    scf.if %2 {
      %cst_10 = arith.constant 0.000000e+00 : f32
      %13 = vector.broadcast %cst_10 : f32 to vector<16x96xf32>
      %c0_11 = arith.constant 0 : index
      %c0_12 = arith.constant 0 : index
      %14 = vector.load %arg6[%c0_11, %c0_12] : memref<16x96xf32, #tpu.memory_space<vmem>>, vector<16x96xf32>
      tpu.vector_store %arg6[%c0_11, %c0_12], %13 {strides = array<i32>} : memref<16x96xf32, #tpu.memory_space<vmem>>, vector<16x96xf32>,
    } else {
    }
    %c0 = arith.constant 0 : index
    %c0_1 = arith.constant 0 : index
    %3 = vector.load %arg3[%c0, %c0_1] : memref<16x32xf32, #tpu.memory_space<vmem>>, vector<16x32xf32>
    %4 = arith.truncf %3 : vector<16x32xf32> to vector<16x32xbf16>
    %c0_2 = arith.constant 0 : index
    %c0_3 = arith.constant 0 : index
    %5 = vector.load %arg6[%c0_2, %c0_3] : memref<16x96xf32, #tpu.memory_space<vmem>>, vector<16x96xf32>
    %c0_4 = arith.constant 0 : index
    %c0_5 = arith.constant 0 : index
    %6 = vector.load %arg4[%c0_4, %c0_5] : memref<32x96xbf16, #tpu.memory_space<vmem>>, vector<32x96xbf16>
    %cst = arith.constant dense<0.000000e+00> : vector<16x96xf32>
    %7 = tpu.matmul %4, %6, %cst {dimension_numbers = #tpu.dot_dimension_numbers<[1], [0], [0], [1], [0, 0, 1, 1], [], []>} : vector<16x32xbf16>, vector<32x96xbf16>, vector<16x96xf32> -> vector<16x96xf32>
    %8 = arith.addf %5, %7 : vector<16x96xf32>
    %c0_6 = arith.constant 0 : index
    %c0_7 = arith.constant 0 : index
    %9 = vector.load %arg6[%c0_6, %c0_7] : memref<16x96xf32, #tpu.memory_space<vmem>>, vector<16x96xf32>
    tpu.vector_store %arg6[%c0_6, %c0_7], %8 {strides = array<i32>} : memref<16x96xf32, #tpu.memory_space<vmem>>, vector<16x96xf32>,
    %c0_i32_8 = arith.constant 0 : i32
    %10 = arith.cmpi eq, %arg2, %c0_i32_8 : i32
    %11 = arith.extui %10 : i1 to i32
    %c0_i32_9 = arith.constant 0 : i32
    %12 = arith.cmpi ne, %11, %c0_i32_9 : i32
    scf.if %12 {
      %c0_10 = arith.constant 0 : index
      %c0_11 = arith.constant 0 : index
      %13 = vector.load %arg6[%c0_10, %c0_11] : memref<16x96xf32, #tpu.memory_space<vmem>>, vector<16x96xf32>
      %14 = arith.truncf %13 : vector<16x96xf32> to vector<16x96xbf16>
      %c0_12 = arith.constant 0 : index
      %c0_13 = arith.constant 0 : index
      %15 = vector.load %arg5[%c0_12, %c0_13] : memref<16x96xbf16, #tpu.memory_space<vmem>>, vector<16x96xbf16>
      tpu.vector_store %arg5[%c0_12, %c0_13], %14 {strides = array<i32>} : memref<16x96xbf16, #tpu.memory_space<vmem>>, vector<16x96xbf16>,
    } else {
    }
    return
  }
  func.func @transform_0(%arg0: i32, %arg1: i32, %arg2: i32) -> (i32, i32) {
    %c0_i32 = arith.constant 0 : i32
    return %arg0, %arg2 : i32, i32
  }
  func.func @transform_1(%arg0: i32, %arg1: i32, %arg2: i32) -> (i32, i32) {
    %c0_i32 = arith.constant 0 : i32
    return %arg2, %arg1 : i32, i32
  }
  func.func @transform_2(%arg0: i32, %arg1: i32, %arg2: i32) -> (i32, i32) {
    %c0_i32 = arith.constant 0 : i32
    return %arg0, %arg1 : i32, i32
  }
}

</mosaic_0001>

<bundles_post_ra>
// kernel: tpu_custom_call.1
= control target key start
LH: loop header
LB: loop body
LE: loop exit
PB: predicated region body
PF: predicated region fallthrough
CT: control target
= control target key end

     0   :  { %7 = vsyncpa [#allocation4], 0  ;;  %s324_s0 = inlined_call_operand.hbm [shape: f32[16,32], index: 0, kind: input, shape index: {}]   ;;  %s325_s1 = inlined_call_operand.hbm [shape: bf16[32,96], index: 1, kind: input, shape index: {}]   ;;  %s326_s2 = inlined_call_operand.hbm [shape: bf16[16,96], index: 2, kind: output, shape index: {}]  }
   0x1   :  { %8 = vsyncpa [#allocation7], 0 }
   0x2   :  { %9 = vsyncpa [#allocation5], 0  ;;  %s254_s9 = smov [#allocation3]   ;;  %s182_s13 = scalar_lea.hbm %s324_s0, 256 }
   0x3   :  { %s15_s10 = sshll.u32 %s254_s9, 4  ;;  %p183_p0 = scmp.ne.s32.totalorder %s324_s0, %s182_s13  ;;  %s16_s10 = int_to_ptr.vmem [resolvable:$true] %s15_s10 }
   0x4   :  { %p186_p1 = scmp.lt.u32.totalorder %s182_s13, %s324_s0 }
   0x6   :  { %p188_p2 = pnand %p186_p1, %p183_p0 }
   0x8   :  { %191 = shalt.err (!%p188_p2)
}
   0x9   :  { %s192_s18 = scalar_lea.vmem %s16_s10, 256  ;;  %p197_p4 = scmp.lt.s32.totalorder %s16_s10, %s16_s10 }
   0xa   :  { %p193_p3 = scmp.ne.s32.totalorder %s16_s10, %s192_s18  ;;  %p198_p5 = scmp.lt.s32.totalorder %s192_s18, %s192_s18 }
   0xc   :  { %p199_p6 = por %p198_p5, %p197_p4 }
   0xe   :  { %p200_p7 = pnand %p199_p6, %p193_p3 }
  0x10   :  { %203 = shalt.err (!%p200_p7)
}
  0x11   :  { %s255_s19 = smov 128   ;;  %s256_s20 = smov 8  }
  0x12   :  { %21 = dma.hbm_to_vmem [thread:$0]  %s324_s0, 256, %s16_s10, [#allocation4], %s255_s19, %s255_s19, %s256_s20  }
  0x13   :  { %s257_s23 = smov [#allocation6]   ;;  %s204_s27 = scalar_lea.hbm %s325_s1, 256 }
  0x14   :  { %s27_s24 = sshll.u32 %s257_s23, 4  ;;  %p205_p8 = scmp.ne.s32.totalorder %s325_s1, %s204_s27  ;;  %s28_s24 = int_to_ptr.vmem [resolvable:$true] %s27_s24 }
  0x15   :  { %p208_p9 = scmp.lt.u32.totalorder %s204_s27, %s325_s1 }
  0x17   :  { %p210_p10 = pnand %p208_p9, %p205_p8 }
  0x19   :  { %213 = shalt.err (!%p210_p10)
}
  0x1a   :  { %s214_s4 = scalar_lea.vmem %s28_s24, 256  ;;  %p219_p12 = scmp.lt.s32.totalorder %s28_s24, %s28_s24 }
  0x1b   :  { %p215_p11 = scmp.ne.s32.totalorder %s28_s24, %s214_s4  ;;  %p220_p13 = scmp.lt.s32.totalorder %s214_s4, %s214_s4 }
  0x1d   :  { %p221_p0 = por %p220_p13, %p219_p12 }
  0x1f   :  { %p222_p1 = pnand %p221_p0, %p215_p11 }
  0x21   :  { %225 = shalt.err (!%p222_p1)
}
  0x22   :  { %s258_s0 = smov 64   ;;  %s259_s5 = smov 4  }
  0x23   :  { %33 = dma.hbm_to_vmem [thread:$0]  %s325_s1, 256, %s28_s24, [#allocation7], %s258_s0, %s258_s0, %s259_s5  }
  0x24   :  { %248 = dma.done.wait [#allocation4], 256  }
  0x25   :  { %249 = vsyncadd [#allocation4], 4294967040 }
  0x26   :  { %250 = dma.done.wait [#allocation7], 256  }
  0x27   :  { %251 = vsyncadd [#allocation7], 4294967040  ;;  %vm45_vm0 = vcmask 785408   ;;  %v260_v0 = vmov 0.0   ;;  %vm261_vm1 = vmmov 0   ;;  %v180_v1 = vld [vmem:[#allocation6] sm:$0xff]  }
  0x28   :  { %46 = vst.msk [vmem:[#allocation2] sm:$0xff] %vm45_vm0, %v260_v0  ;;  %47 = vst.msk [vmem:[#allocation2 + $0x8] sm:$0xff] %vm45_vm0, %v260_v0  ;;  %163 = vmatprep.subr.bf16.mxu0 %v260_v0  ;;  %167 = vmatprep.mubr.msk.bf16.mxu0 %vm261_vm1, %v260_v0  ;;  %v181_v2 = vld [vmem:[#allocation6 + $0x8] sm:$0xff]   ;;  %v48_v3 = vld [vmem:[#allocation3] sm:$0xff]  ;;  %vm69_vm2 = vcmask 261120   ;;  %vm132_vm3 = vcmask 781312  }
  0x29   :  { %164 = vmatpush3.bf16.msra.mxu0 %v180_v1  ;;  %v49_v4 = vld [vmem:[#allocation3 + $0x8] sm:$0xff]  ;;  %s262_s1 = smov [#allocation8]  }
  0x2a   :  { %165 = vmatprep.subr.bf16.mxu0 %v260_v0  ;;  %v50_v5 = vpack.c.bf16 %v49_v4, %v48_v3  ;;  %s140_s8 = sshll.u32 %s262_s1, 4  ;;  %s141_s8 = int_to_ptr.vmem [resolvable:$true] %s140_s8 }
  0x2b   :  { %s226_s9 = scalar_lea.vmem %s141_s8, 128  ;;  %p231_p3 = scmp.lt.s32.totalorder %s141_s8, %s141_s8 }
  0x2c   :  { %p227_p2 = scmp.ne.s32.totalorder %s141_s8, %s226_s9  ;;  %p232_p4 = scmp.lt.s32.totalorder %s226_s9, %s226_s9 }
  0x2d   :  { %166 = vmatpush3.bf16.msra.mxu0 %v181_v2 }
  0x2e   :  { %p233_p5 = por %p232_p4, %p231_p3 }
  0x2f   :  { %v51_v6 = vld [vmem:[#allocation2] sm:$0xff]  ;;  %v52_v8 = vld [vmem:[#allocation2 + $0x8] sm:$0xff] }
  0x30   :  { %168 = vmatmul.mubr.msk.bf16.vlgmr.msra.gmra.mrb[0].mxu0 %vm69_vm2, %v50_v5  ;;  %p234_p6 = pnand %p233_p5, %p227_p2 }
 0x103   :  { %v107_v7 = vpop.f32.mrb[0].mxu0 }
 0x104   :  { %v114_v9 = vadd.f32 %v107_v7, %v51_v6  ;;  %v169_v10 = vpop.f32.mrb[1].mxu0 }
 0x105   :  { %v110_v11 = vpop.f32.mrb[2].mxu0 }
 0x106   :  { %117 = vst.msk [vmem:[#allocation2] sm:$0xff] %vm45_vm0, %v114_v9  ;;  %v115_v12 = vadd.f32 %v110_v11, %v52_v8  ;;  %v170_v13 = vpop.f32.mrb[3].mxu0 }
 0x108   :  { %118 = vst.msk [vmem:[#allocation2 + $0x8] sm:$0xff] %vm45_vm0, %v115_v12 }
 0x10d   :  { %v122_v14 = vld [vmem:[#allocation2] sm:$0xff] }
 0x10e   :  { %v158_v15 = vpack.c.bf16 %v122_v14, %v122_v14 }
 0x10f   :  { %v123_v16 = vld [vmem:[#allocation2 + $0x8] sm:$0xff] }
 0x110   :  { %v159_v17 = vpack.c.bf16 %v123_v16, %v123_v16  ;;  %133 = vst.msk [vmem:[#allocation8] sm:$0xf] %vm132_vm3, %v158_v15 }
 0x112   :  { %134 = vst.msk [vmem:[#allocation8 + $0x4] sm:$0xf] %vm132_vm3, %v159_v17 }
 0x113   :  { %237 = shalt.err (!%p234_p6)
}
 0x114   :  { %s238_s12 = scalar_lea.hbm %s326_s2, 128 }
 0x115   :  { %p239_p7 = scmp.ne.s32.totalorder %s326_s2, %s238_s12  ;;  %p242_p8 = scmp.lt.u32.totalorder %s238_s12, %s326_s2 }
 0x117   :  { %p244_p9 = pnand %p242_p8, %p239_p7 }
 0x119   :  { %247 = shalt.err (!%p244_p9)
}
 0x11a   :  { %146 = dma.vmem_to_hbm [thread:$0]  %s141_s8, 128, %s326_s2, [#allocation5], %s258_s0, %s258_s0, %s259_s5  }
 0x11b   :  { %252 = dma.done.wait [#allocation5], 128  }
 0x11c   :  { %253 = vsyncadd [#allocation5], 4294967168 }
 0x11d   :  { %150 = vsyncpa [#allocation4], 1 }
 0x11e   :  { %151 = vsyncpa [#allocation7], 1 }
 0x11f   :  { %152 = vsyncpa [#allocation5], 1 }

</bundles_post_ra>
